<compile_context>
chip_gen: v7x
topology: tpu7x:2x2x1
jax: 0.10.0
libtpu: 0.0.40
codegen_flags: <defaults>
</compile_context>

<pallas_src>
import functools

import jax
import jax.numpy as jnp
from jax.experimental import pallas as pl
from jax.experimental.pallas import tpu as pltpu

_MIB = 1024 * 1024


def _round_up(x, m):
    return ((x + m - 1) // m) * m


@functools.lru_cache(maxsize=None)
def _tpu_plan():
    """(row_tile, vmem_cap_bytes) derived from the local TPU generation."""
    try:
        kind = jax.devices()[0].device_kind.lower()
    except Exception:
        kind = ""
    try:
        vmem_cap = int(pltpu.get_tpu_info().vmem_capacity_bytes)
    except Exception:
        vmem_cap = 128 * _MIB
    if "v7" in kind:
        vmem_cap = min(vmem_cap, 64 * _MIB)   # 64 MiB per TensorCore on v7x
    is_v5e = ("v5 lite" in kind) or ("v5e" in kind) or ("v5lite" in kind)
    tm = 128 if is_v5e else 256               # v6e / v7x MXUs are 256 wide
    cap = min(96 * _MIB, (3 * vmem_cap) // 4)  # leave compiler headroom
    return tm, cap


def _ginconv_kernel(relu_flags, pre_relu, *refs):
    """refs = (adj, feat, [b0_pre], w0, b0, w1, b1, ..., o_ref, acc_ref).

    adj  : (tm, tk) int8/bf16 streamed adjacency tile
    feat : (tk, F)  bf16 streamed features (x, or x @ W0^T if reassociated)
    w_i  : (in, out) bf16 pre-transposed weights, b_i : (1, out) f32
    acc  : (tm, F)  f32 VMEM accumulator for the A @ X partial sums
    """
    adj_ref, feat_ref = refs[0], refs[1]
    o_ref, acc_ref = refs[-2], refs[-1]
    mlp_refs = refs[2:-2]

    k = pl.program_id(1)

    @pl.when(k == 0)
    def _():
        acc_ref[...] = jnp.zeros_like(acc_ref)

    # Aggregate: A_tile @ X_tile on the MXU (bf16 operands, f32 accumulation).
    # The int8 -> bf16 upcast is a VPU op hidden under the adj DMA / MXU work.
    a = adj_ref[...].astype(jnp.bfloat16)
    acc_ref[...] += jnp.dot(a, feat_ref[...], preferred_element_type=jnp.float32)

    @pl.when(k == pl.num_programs(1) - 1)
    def _():
        h = acc_ref[...]
        rest = mlp_refs
        if pre_relu is not None:
            # Reassociated layer 0: bias added AFTER aggregation (matches ref).
            h = h + rest[0][...]
            if pre_relu:
                h = jnp.maximum(h, 0.0)
            rest = rest[1:]
        for s, relu in enumerate(relu_flags):
            w_ref = rest[2 * s]      # [in, out] bf16
            b_ref = rest[2 * s + 1]  # [1, out]  f32
            h = jnp.dot(h.astype(w_ref.dtype), w_ref[...],
                        preferred_element_type=jnp.float32) + b_ref[...]
            if relu:
                h = jnp.maximum(h, 0.0)
        o_ref[...] = h.astype(o_ref.dtype)


@functools.partial(jax.jit, static_argnames=("binary_adj",))
def ginconv_forward(x, adj, weights, biases, binary_adj=True):
    """x: [N, in_dim], adj: [N, N] (binary), weights[i]: [out_i, in_i] (torch
    layout), biases[i]: [out_i]. Returns [N, hid_dim]."""
    num_layer = len(weights)
    N, in_dim = x.shape
    hid_dim = weights[-1].shape[0]

    LANE = 128
    Fp = _round_up(in_dim, LANE)
    Hp = _round_up(hid_dim, LANE)

    f32, bf16 = jnp.float32, jnp.bfloat16
    tm, vmem_cap = _tpu_plan()

    if binary_adj:
        adj_dtype, adj_bytes = jnp.int8, 1     # binary 0/1 -> exact
    else:
        adj_dtype, adj_bytes = bf16, 2         # weighted graphs: bf16-rounded

    # --- pad + cast MLP params (tiny, no N^2 temps) --------------------------
    w_pads, b_pads = [], []
    for i in range(num_layer):
        w = jnp.asarray(weights[i], f32)       # [out, in] torch layout
        b = jnp.asarray(biases[i], f32)
        in_i = Fp if i == 0 else Hp
        wp = jnp.zeros((in_i, Hp), f32).at[:w.shape[1], :w.shape[0]].set(w.T).astype(bf16)
        bp = jnp.zeros((1, Hp), f32).at[0, :b.shape[0]].set(b)
        w_pads.append(wp)
        b_pads.append(bp)

    # Reassociate layer 0 when the raw feature dim is wider than the hidden
    # dim: adj @ (x @ W0^T) + b0 == (adj @ x) @ W0^T + b0, so the O(N^2)
    # matmul contracts over Hp instead of Fp.
    if Fp > Hp:
        feat_cols = Hp
        pre_relu = num_layer > 1               # ReLU after layer 0 iff not last
        mlp_extra = [b_pads[0]]
        stages = list(zip(w_pads[1:], b_pads[1:]))
        relu_flags = tuple(i != num_layer - 1 for i in range(1, num_layer))
    else:
        feat_cols = Fp
        pre_relu = None
        mlp_extra = []
        stages = list(zip(w_pads, b_pads))
        relu_flags = tuple(i != num_layer - 1 for i in range(num_layer))

    mlp_ops = mlp_extra + [op for wb in stages for op in wb]
    mlp_bytes = sum(int(op.size) * op.dtype.itemsize for op in mlp_ops)

    # --- explicit VMEM budget -> choose the K (adjacency-column) tile --------
    def est_vmem(tk_):
        e = 2 * tm * tk_ * adj_bytes            # streamed adj (double-buffered)
        e += 2 * tk_ * feat_cols * 2            # streamed feat (double-buffered)
        e += 2 * mlp_bytes                      # resident weights/biases (2 bufs)
        e += 2 * tm * Hp * 4                    # output tile (2 bufs)
        e += tm * feat_cols * 4                 # f32 accumulator scratch
        e += tm * tk_ * 2                       # in-kernel bf16 upcast temp
        e += 2 * tm * max(feat_cols, Hp) * 4    # in-kernel f32 MLP temps
        return e

    headroom = 2 * _MIB
    Np0 = _round_up(N, tm)
    if est_vmem(Np0) + headroom <= vmem_cap:
        tk = Np0                                # single K block: feat fetched once
    else:
        tk = 512
        for cand in (8192, 4096, 2048, 1024, 512):
            if cand <= Np0 and est_vmem(cand) + headroom <= vmem_cap:
                tk = cand
                break
    Np = _round_up(N, max(tm, tk))              # tk is a multiple of tm

    # --- pad operands: cast first, then pad (narrow-dtype N^2 temps only) ----
    adj_p = jnp.pad(adj.astype(adj_dtype), ((0, Np - N), (0, Np - N)))
    x_p = jnp.pad(x.astype(bf16), ((0, Np - N), (0, Fp - in_dim)))
    if Fp > Hp:
        feat = jnp.dot(x_p, w_pads[0], preferred_element_type=f32).astype(bf16)
    else:
        feat = x_p

    operands = [adj_p, feat] + mlp_ops

    def resident(shape):
        nd = len(shape)
        return pl.BlockSpec(shape, lambda i, k, _nd=nd: (0,) * _nd)

    in_specs = [pl.BlockSpec((tm, tk), lambda i, k: (i, k)),           # streamed adj
                pl.BlockSpec((tk, feat_cols), lambda i, k: (k, 0))]    # streamed feat
    in_specs += [resident(op.shape) for op in mlp_ops]
    out_spec = pl.BlockSpec((tm, Hp), lambda i, k: (i, 0))             # lane-dense out

    grid = (Np // tm, Np // tk)

    # Advisory cost estimate so XLA schedules neighbors sensibly.
    flops = 2 * Np * Np * feat_cols
    for w, _ in stages:
        flops += 2 * Np * w.shape[0] * w.shape[1]
    feat_passes = 1 if grid[1] == 1 else grid[0]
    bytes_accessed = (Np * Np * adj_bytes + feat_passes * Np * feat_cols * 2
                      + mlp_bytes + Np * Hp * 4)

    vmem_limit = int(min(vmem_cap, max(32 * _MIB, est_vmem(tk) + 8 * _MIB)))

    kernel = functools.partial(_ginconv_kernel, relu_flags, pre_relu)

    out_p = pl.pallas_call(
        kernel,
        out_shape=jax.ShapeDtypeStruct((Np, Hp), x.dtype),
        grid_spec=pltpu.PrefetchScalarGridSpec(
            num_scalar_prefetch=0,
            grid=grid,
            in_specs=in_specs,
            out_specs=out_spec,
            scratch_shapes=[pltpu.VMEM((tm, feat_cols), jnp.float32)],
        ),
        compiler_params=pltpu.CompilerParams(
            dimension_semantics=("parallel", "arbitrary"),
            vmem_limit_bytes=vmem_limit,
        ),
        cost_estimate=pl.CostEstimate(
            flops=int(flops), transcendentals=0,
            bytes_accessed=int(bytes_accessed)),
    )(*operands)

    return out_p[:N, :hid_dim]


def init_ginconv_params(key, in_dim, hid_dim, num_layer, bias=True):
    """Deterministic nn.Linear-style init: U(-1/sqrt(fan_in), 1/sqrt(fan_in))."""
    weights, biases = [], []
    for i in range(num_layer):
        fan_in = in_dim if i == 0 else hid_dim
        key, kw, kb = jax.random.split(key, 3)
        bound = 1.0 / jnp.sqrt(jnp.float32(fan_in))
        w = jax.random.uniform(kw, (hid_dim, fan_in), jnp.float32, -bound, bound)
        if bias:
            b = jax.random.uniform(kb, (hid_dim,), jnp.float32, -bound, bound)
        else:
            b = jnp.zeros((hid_dim,), jnp.float32)
        weights.append(w)
        biases.append(b)
    return weights, biases


def ginconv_reference(x, adj, weights, biases):
    """Pure-JAX f32 reference matching the PyTorch forward."""
    h = adj @ x
    num_layer = len(weights)
    for i, (w, b) in enumerate(zip(weights, biases)):
        h = h @ w.T + b
        if i != num_layer - 1:
            h = jnp.maximum(h, 0.0)
    return h


if __name__ == "__main__":
    key = jax.random.PRNGKey(0)

    def run_case(key, N, in_dim, hid_dim, num_layer, density=0.1):
        key, kx, ka, kp = jax.random.split(key, 4)
        x = jax.random.normal(kx, (N, in_dim), jnp.float32)
        adj = (jax.random.uniform(ka, (N, N), jnp.float32) < density).astype(jnp.float32)
        weights, biases = init_ginconv_params(kp, in_dim, hid_dim, num_layer, bias=True)

        out = jax.block_until_ready(ginconv_forward(x, adj, weights, biases))
        ref = ginconv_reference(x, adj, weights, biases)

        assert out.shape == (N, hid_dim), out.shape
        # bf16 matmul operands with f32 accumulation -> loosened tolerance.
        assert jnp.allclose(out, ref, atol=2e-1, rtol=5e-2), \
            float(jnp.max(jnp.abs(out - ref)))
        return key

    # Standard path: non-aligned N (row padding), 2-layer MLP, row grid > 1.
    key = run_case(key, N=200, in_dim=32, hid_dim=32, num_layer=2)
    # Wide-input path: exercises the adj@(x@W0^T) reassociation + 3-layer MLP.
    key = run_case(key, N=256, in_dim=160, hid_dim=64, num_layer=3)

    print("KERNEL_OK")
</pallas_src>

<mosaic_0001>
module attributes {stable_mosaic.version = 11 : i64} {
  func.func @_ginconv_kernel(%arg0: i32, %arg1: i32, %arg2: memref<256x256xi8, #tpu.memory_space<vmem>>, %arg3: memref<256x128xbf16, #tpu.memory_space<vmem>>, %arg4: memref<128x128xbf16, #tpu.memory_space<vmem>>, %arg5: memref<1x128xf32, #tpu.memory_space<vmem>>, %arg6: memref<128x128xbf16, #tpu.memory_space<vmem>>, %arg7: memref<1x128xf32, #tpu.memory_space<vmem>>, %arg8: memref<256x128xf32, #tpu.memory_space<vmem>>, %arg9: memref<256x128xf32, #tpu.memory_space<vmem>>) attributes {dimension_semantics = [#tpu.dimension_semantics<parallel>, #tpu.dimension_semantics<arbitrary>], iteration_bounds = array<i64: 1, 1>, scalar_prefetch = 0 : i64, scratch_operands = 1 : i64, tpu.core_type = #tpu.core_type<tc>, window_params = [{transform_indices = @transform_0, window_bounds = array<i64: 256, 256>}, {transform_indices = @transform_1, window_bounds = array<i64: 256, 128>}, {pipeline_mode = #tpu.pipeline_mode<synchronous>, transform_indices = @transform_2, window_bounds = array<i64: 128, 128>}, {pipeline_mode = #tpu.pipeline_mode<synchronous>, transform_indices = @transform_3, window_bounds = array<i64: 1, 128>}, {pipeline_mode = #tpu.pipeline_mode<synchronous>, transform_indices = @transform_4, window_bounds = array<i64: 128, 128>}, {pipeline_mode = #tpu.pipeline_mode<synchronous>, transform_indices = @transform_5, window_bounds = array<i64: 1, 128>}, {transform_indices = @transform_6, window_bounds = array<i64: 256, 128>}]} {
    %c0_i32 = arith.constant 0 : i32
    %0 = arith.cmpi eq, %arg1, %c0_i32 : i32
    %1 = arith.extui %0 : i1 to i32
    %c0_i32_0 = arith.constant 0 : i32
    %2 = arith.cmpi ne, %1, %c0_i32_0 : i32
    scf.if %2 {
      %cst_10 = arith.constant 0.000000e+00 : f32
      %13 = vector.broadcast %cst_10 : f32 to vector<256x128xf32>
      %c0_11 = arith.constant 0 : index
      %c0_12 = arith.constant 0 : index
      %14 = vector.load %arg9[%c0_11, %c0_12] : memref<256x128xf32, #tpu.memory_space<vmem>>, vector<256x128xf32>
      tpu.vector_store %arg9[%c0_11, %c0_12], %13 {strides = array<i32>} : memref<256x128xf32, #tpu.memory_space<vmem>>, vector<256x128xf32>,
    } else {
    }
    %c0 = arith.constant 0 : index
    %c0_1 = arith.constant 0 : index
    %3 = vector.load %arg2[%c0, %c0_1] : memref<256x256xi8, #tpu.memory_space<vmem>>, vector<256x256xi8>
    %4 = arith.sitofp %3 : vector<256x256xi8> to vector<256x256xbf16>
    %c0_2 = arith.constant 0 : index
    %c0_3 = arith.constant 0 : index
    %5 = vector.load %arg9[%c0_2, %c0_3] : memref<256x128xf32, #tpu.memory_space<vmem>>, vector<256x128xf32>
    %c0_4 = arith.constant 0 : index
    %c0_5 = arith.constant 0 : index
    %6 = vector.load %arg3[%c0_4, %c0_5] : memref<256x128xbf16, #tpu.memory_space<vmem>>, vector<256x128xbf16>
    %cst = arith.constant dense<0.000000e+00> : vector<256x128xf32>
    %7 = tpu.matmul %4, %6, %cst {dimension_numbers = #tpu.dot_dimension_numbers<[1], [0], [0], [1], [0, 0, 1, 1], [], []>} : vector<256x256xbf16>, vector<256x128xbf16>, vector<256x128xf32> -> vector<256x128xf32>
    %8 = arith.addf %5, %7 : vector<256x128xf32>
    %c0_6 = arith.constant 0 : index
    %c0_7 = arith.constant 0 : index
    %9 = vector.load %arg9[%c0_6, %c0_7] : memref<256x128xf32, #tpu.memory_space<vmem>>, vector<256x128xf32>
    tpu.vector_store %arg9[%c0_6, %c0_7], %8 {strides = array<i32>} : memref<256x128xf32, #tpu.memory_space<vmem>>, vector<256x128xf32>,
    %c0_i32_8 = arith.constant 0 : i32
    %10 = arith.cmpi eq, %arg1, %c0_i32_8 : i32
    %11 = arith.extui %10 : i1 to i32
    %c0_i32_9 = arith.constant 0 : i32
    %12 = arith.cmpi ne, %11, %c0_i32_9 : i32
    scf.if %12 {
      %c0_10 = arith.constant 0 : index
      %c0_11 = arith.constant 0 : index
      %13 = vector.load %arg9[%c0_10, %c0_11] : memref<256x128xf32, #tpu.memory_space<vmem>>, vector<256x128xf32>
      %14 = arith.truncf %13 : vector<256x128xf32> to vector<256x128xbf16>
      %c0_12 = arith.constant 0 : index
      %c0_13 = arith.constant 0 : index
      %15 = vector.load %arg4[%c0_12, %c0_13] : memref<128x128xbf16, #tpu.memory_space<vmem>>, vector<128x128xbf16>
      %cst_14 = arith.constant dense<0.000000e+00> : vector<256x128xf32>
      %16 = tpu.matmul %14, %15, %cst_14 {dimension_numbers = #tpu.dot_dimension_numbers<[1], [0], [0], [1], [0, 0, 1, 1], [], []>} : vector<256x128xbf16>, vector<128x128xbf16>, vector<256x128xf32> -> vector<256x128xf32>
      %c0_15 = arith.constant 0 : index
      %c0_16 = arith.constant 0 : index
      %17 = vector.load %arg5[%c0_15, %c0_16] : memref<1x128xf32, #tpu.memory_space<vmem>>, vector<1x128xf32>
      %18 = vector.broadcast %17 : vector<1x128xf32> to vector<256x128xf32>
      %19 = arith.addf %16, %18 : vector<256x128xf32>
      %cst_17 = arith.constant 0.000000e+00 : f32
      %20 = vector.broadcast %cst_17 : f32 to vector<256x128xf32>
      %21 = arith.maximumf %19, %20 : vector<256x128xf32>
      %22 = arith.truncf %21 : vector<256x128xf32> to vector<256x128xbf16>
      %c0_18 = arith.constant 0 : index
      %c0_19 = arith.constant 0 : index
      %23 = vector.load %arg6[%c0_18, %c0_19] : memref<128x128xbf16, #tpu.memory_space<vmem>>, vector<128x128xbf16>
      %cst_20 = arith.constant dense<0.000000e+00> : vector<256x128xf32>
      %24 = tpu.matmul %22, %23, %cst_20 {dimension_numbers = #tpu.dot_dimension_numbers<[1], [0], [0], [1], [0, 0, 1, 1], [], []>} : vector<256x128xbf16>, vector<128x128xbf16>, vector<256x128xf32> -> vector<256x128xf32>
      %c0_21 = arith.constant 0 : index
      %c0_22 = arith.constant 0 : index
      %25 = vector.load %arg7[%c0_21, %c0_22] : memref<1x128xf32, #tpu.memory_space<vmem>>, vector<1x128xf32>
      %26 = vector.broadcast %25 : vector<1x128xf32> to vector<256x128xf32>
      %27 = arith.addf %24, %26 : vector<256x128xf32>
      %c0_23 = arith.constant 0 : index
      %c0_24 = arith.constant 0 : index
      %28 = vector.load %arg8[%c0_23, %c0_24] : memref<256x128xf32, #tpu.memory_space<vmem>>, vector<256x128xf32>
      tpu.vector_store %arg8[%c0_23, %c0_24], %27 {strides = array<i32>} : memref<256x128xf32, #tpu.memory_space<vmem>>, vector<256x128xf32>,
    } else {
    }
    return
  }
  func.func @transform_0(%arg0: i32, %arg1: i32) -> (i32, i32) {
    %c0_i32 = arith.constant 0 : i32
    return %arg0, %arg1 : i32, i32
  }
  func.func @transform_1(%arg0: i32, %arg1: i32) -> (i32, i32) {
    %c0_i32 = arith.constant 0 : i32
    %c0_i32_0 = arith.constant 0 : i32
    return %arg1, %c0_i32 : i32, i32
  }
  func.func @transform_2(%arg0: i32, %arg1: i32) -> (i32, i32) {
    %c0_i32 = arith.constant 0 : i32
    %c0_i32_0 = arith.constant 0 : i32
    %c0_i32_1 = arith.constant 0 : i32
    return %c0_i32, %c0_i32_0 : i32, i32
  }
  func.func @transform_3(%arg0: i32, %arg1: i32) -> (i32, i32) {
    %c0_i32 = arith.constant 0 : i32
    %c0_i32_0 = arith.constant 0 : i32
    %c0_i32_1 = arith.constant 0 : i32
    return %c0_i32, %c0_i32_0 : i32, i32
  }
  func.func @transform_4(%arg0: i32, %arg1: i32) -> (i32, i32) {
    %c0_i32 = arith.constant 0 : i32
    %c0_i32_0 = arith.constant 0 : i32
    %c0_i32_1 = arith.constant 0 : i32
    return %c0_i32, %c0_i32_0 : i32, i32
  }
  func.func @transform_5(%arg0: i32, %arg1: i32) -> (i32, i32) {
    %c0_i32 = arith.constant 0 : i32
    %c0_i32_0 = arith.constant 0 : i32
    %c0_i32_1 = arith.constant 0 : i32
    return %c0_i32, %c0_i32_0 : i32, i32
  }
  func.func @transform_6(%arg0: i32, %arg1: i32) -> (i32, i32) {
    %c0_i32 = arith.constant 0 : i32
    %c0_i32_0 = arith.constant 0 : i32
    return %arg0, %c0_i32 : i32, i32
  }
}

</mosaic_0001>

<bundles_post_ra>
// kernel: ginconv_forward.1
= control target key start
LH: loop header
LB: loop body
LE: loop exit
PB: predicated region body
PF: predicated region fallthrough
CT: control target
= control target key end

     0   :  { %s1763_s1 = inlined_call_operand.vmem [shape: bf16[256,128], index: 1, kind: input, shape index: {}]   ;;  %s1764_s0 = inlined_call_operand.vmem [shape: s8[256,256], index: 0, kind: input, shape index: {}]   ;;  %s1765_s2 = inlined_call_operand.vmem [shape: bf16[128,128], index: 2, kind: input, shape index: {}]   ;;  %s1766_s4 = inlined_call_operand.vmem [shape: bf16[128,128], index: 4, kind: input, shape index: {}]   ;;  %s1767_s3 = inlined_call_operand.vmem [shape: f32[1,128], index: 3, kind: input, shape index: {}]   ;;  %s1768_s5 = inlined_call_operand.vmem [shape: f32[1,128], index: 5, kind: input, shape index: {}]   ;;  %s1769_s6 = inlined_call_operand.vmem [shape: f32[256,128], index: 6, kind: output, shape index: {}]  }
   0x1   :  { %v1382_v0 = vld [vmem:[%s1763_s1 + $0x40] sm:$0xff]   ;;  %v1384_v2 = vld [vmem:[%s1763_s1 + $0x48] sm:$0xff]   ;;  %v1386_v4 = vld [vmem:[%s1763_s1 + $0x50] sm:$0xff]  }
   0x2   :  { %v1383_v1 = vld [vmem:[%s1763_s1] sm:$0xff]   ;;  %1126 = vmatprep.subr.bf16.mxu0 %v1382_v0  ;;  %v1385_v3 = vld [vmem:[%s1763_s1 + $0x8] sm:$0xff]   ;;  %v1387_v5 = vld [vmem:[%s1763_s1 + $0x10] sm:$0xff]  }
   0x3   :  { %1127 = vmatpush3.bf16.msra.mxu0 %v1383_v1  ;;  %v1388_v6 = vld [vmem:[%s1763_s1 + $0x58] sm:$0xff]   ;;  %v1390_v8 = vld [vmem:[%s1763_s1 + $0x60] sm:$0xff]   ;;  %v1392_v10 = vld [vmem:[%s1763_s1 + $0x68] sm:$0xff]  }
   0x4   :  { %1128 = vmatprep.subr.bf16.mxu0 %v1384_v2  ;;  %v1389_v7 = vld [vmem:[%s1763_s1 + $0x18] sm:$0xff]   ;;  %v1391_v9 = vld [vmem:[%s1763_s1 + $0x20] sm:$0xff]   ;;  %v61_v11 = vld [vmem:[%s1764_s0 + $0x8] sm:$0xff] }
   0x5   :  { %v77_v12 = vunpack.c.l.s8.bf16 %v61_v11  ;;  %v1393_v13 = vld [vmem:[%s1763_s1 + $0x28] sm:$0xff]   ;;  %v1394_v14 = vld [vmem:[%s1763_s1 + $0x70] sm:$0xff]   ;;  %v1396_v16 = vld [vmem:[%s1763_s1 + $0x78] sm:$0xff]   ;;  %v79_v23 = vunpack.c.h.s8.bf16 %v61_v11 }
   0x6   :  { %v1395_v15 = vld [vmem:[%s1763_s1 + $0x30] sm:$0xff]   ;;  %v1397_v17 = vld [vmem:[%s1763_s1 + $0x38] sm:$0xff]   ;;  %v60_v18 = vld [vmem:[%s1764_s0] sm:$0xff] }
   0x7   :  { %1129 = vmatpush3.bf16.msra.mxu0 %v1385_v3  ;;  %300 = vmatprep.mubr.bf16.mxu0 %v77_v12  ;;  %v1398_v19 = vld [vmem:[%s1765_s2] sm:$0xff]   ;;  %v1399_v20 = vld [vmem:[%s1765_s2 + $0x8] sm:$0xff]   ;;  %v76_v21 = vunpack.c.l.s8.bf16 %v60_v18  ;;  %v1400_v22 = vld [vmem:[%s1765_s2 + $0x10] sm:$0xff]   ;;  %v78_v26 = vunpack.c.h.s8.bf16 %v60_v18 }
   0x8   :  { %1130 = vmatprep.subr.bf16.mxu0 %v1386_v4  ;;  %1286 = vmatprep.subr.bf16.mxu1 %v1398_v19  ;;  %v1401_v24 = vld [vmem:[%s1765_s2 + $0x18] sm:$0xff]   ;;  %v62_v28 = vld [vmem:[%s1764_s0 + $0x10] sm:$0xff]  ;;  %v65_v31 = vld [vmem:[%s1764_s0 + $0x28] sm:$0xff] }
   0x9   :  { %1287 = vmatpush3.bf16.msra.mxu1 %v1398_v19  ;;  %v63_v25 = vld [vmem:[%s1764_s0 + $0x18] sm:$0xff]  ;;  %v80_v29 = vunpack.c.l.s8.bf16 %v62_v28  ;;  %v82_v32 = vunpack.c.h.s8.bf16 %v62_v28  ;;  %v85_v33 = vunpack.c.l.s8.bf16 %v65_v31  ;;  %v64_v34 = vld [vmem:[%s1764_s0 + $0x20] sm:$0xff]  ;;  %v87_v36 = vunpack.c.h.s8.bf16 %v65_v31  ;;  %v66_v40 = vld [vmem:[%s1764_s0 + $0x30] sm:$0xff] }
   0xa   :  { %1288 = vmatprep.subr.bf16.mxu1 %v1399_v20  ;;  %v81_v27 = vunpack.c.l.s8.bf16 %v63_v25  ;;  %v83_v30 = vunpack.c.h.s8.bf16 %v63_v25  ;;  %v84_v35 = vunpack.c.l.s8.bf16 %v64_v34  ;;  %v67_v37 = vld [vmem:[%s1764_s0 + $0x38] sm:$0xff]  ;;  %v86_v38 = vunpack.c.h.s8.bf16 %v64_v34  ;;  %v69_v43 = vld [vmem:[%s1764_s0 + $0x48] sm:$0xff]  ;;  %v68_v46 = vld [vmem:[%s1764_s0 + $0x40] sm:$0xff] }
   0xb   :  { %1131 = vmatpush3.bf16.msra.mxu0 %v1387_v5  ;;  %v89_v39 = vunpack.c.l.s8.bf16 %v67_v37  ;;  %v88_v41 = vunpack.c.l.s8.bf16 %v66_v40  ;;  %v91_v42 = vunpack.c.h.s8.bf16 %v67_v37  ;;  %v90_v44 = vunpack.c.h.s8.bf16 %v66_v40  ;;  %v71_v49 = vld [vmem:[%s1764_s0 + $0x58] sm:$0xff]  ;;  %v70_v52 = vld [vmem:[%s1764_s0 + $0x50] sm:$0xff]  ;;  %v1402_v55 = vld [vmem:[%s1765_s2 + $0x20] sm:$0xff]  }
   0xc   :  { %1132 = vmatprep.subr.bf16.mxu0 %v1388_v6  ;;  %v93_v45 = vunpack.c.l.s8.bf16 %v69_v43  ;;  %v92_v47 = vunpack.c.l.s8.bf16 %v68_v46  ;;  %v95_v48 = vunpack.c.h.s8.bf16 %v69_v43  ;;  %v94_v50 = vunpack.c.h.s8.bf16 %v68_v46  ;;  %v73_v56 = vld [vmem:[%s1764_s0 + $0x68] sm:$0xff]  ;;  %v72_v60 = vld [vmem:[%s1764_s0 + $0x60] sm:$0xff]  ;;  %v1404_v61 = vld [vmem:[%s1765_s2 + $0x30] sm:$0xff]  }
   0xd   :  { %1289 = vmatpush3.bf16.msra.mxu1 %v1399_v20  ;;  %v97_v51 = vunpack.c.l.s8.bf16 %v71_v49  ;;  %v96_v53 = vunpack.c.l.s8.bf16 %v70_v52  ;;  %v99_v54 = vunpack.c.h.s8.bf16 %v71_v49  ;;  %v98_v57 = vunpack.c.h.s8.bf16 %v70_v52  ;;  %v1403_v59 = vld [vmem:[%s1765_s2 + $0x28] sm:$0xff]   ;;  %v1405_v0 = vld [vmem:[%s1765_s2 + $0x38] sm:$0xff]   ;;  %v74_v4 = vld [vmem:[%s1764_s0 + $0x70] sm:$0xff] }
   0xe   :  { %1290 = vmatprep.subr.bf16.mxu1 %v1400_v22  ;;  %v101_v58 = vunpack.c.l.s8.bf16 %v73_v56  ;;  %v100_v62 = vunpack.c.l.s8.bf16 %v72_v60  ;;  %v103_v63 = vunpack.c.h.s8.bf16 %v73_v56  ;;  %v75_v1 = vld [vmem:[%s1764_s0 + $0x78] sm:$0xff]  ;;  %v102_v2 = vunpack.c.h.s8.bf16 %v72_v60  ;;  %v1408_v28 = vld [vmem:[%s1766_s4 + $0x10] sm:$0xff]   ;;  %v1410_v37 = vld [vmem:[%s1766_s4 + $0x20] sm:$0xff]  }
   0xf   :  { %1133 = vmatpush3.bf16.msra.mxu0 %v1389_v7  ;;  %v105_v3 = vunpack.c.l.s8.bf16 %v75_v1  ;;  %v104_v5 = vunpack.c.l.s8.bf16 %v74_v4  ;;  %v107_v6 = vunpack.c.h.s8.bf16 %v75_v1  ;;  %v106_v7 = vunpack.c.h.s8.bf16 %v74_v4 }
  0x10   :  { %1134 = vmatprep.subr.bf16.mxu0 %v1390_v8 }
  0x11   :  { %1291 = vmatpush3.bf16.msra.mxu1 %v1400_v22 }
  0x12   :  { %1292 = vmatprep.subr.bf16.mxu1 %v1401_v24 }
  0x13   :  { %1135 = vmatpush3.bf16.msra.mxu0 %v1391_v9 }
  0x14   :  { %1136 = vmatprep.subr.bf16.mxu0 %v1392_v10  ;;  %v1406_v10 = vld [vmem:[%s1766_s4] sm:$0xff]  }
  0x15   :  { %1293 = vmatpush3.bf16.msra.mxu1 %v1401_v24 }
  0x16   :  { %1294 = vmatprep.subr.bf16.mxu1 %v1402_v55 }
  0x17   :  { %1137 = vmatpush3.bf16.msra.mxu0 %v1393_v13 }
  0x18   :  { %1138 = vmatprep.subr.bf16.mxu0 %v1394_v14 }
  0x19   :  { %1295 = vmatpush3.bf16.msra.mxu1 %v1402_v55 }
  0x1a   :  { %1296 = vmatprep.subr.bf16.mxu1 %v1403_v59 }
  0x1b   :  { %1139 = vmatpush3.bf16.msra.mxu0 %v1395_v15 }
  0x1c   :  { %1140 = vmatprep.subr.bf16.mxu0 %v1396_v16 }
  0x1d   :  { %1297 = vmatpush3.bf16.msra.mxu1 %v1403_v59 }
  0x1e   :  { %1298 = vmatprep.subr.bf16.mxu1 %v1404_v61 }
  0x1f   :  { %1141 = vmatpush3.bf16.msra.mxu0 %v1397_v17 }
  0x21   :  { %1299 = vmatpush3.bf16.msra.mxu1 %v1404_v61 }
  0x22   :  { %301 = vmatmul.mubr.bf16.vlgmr.msra.gmra.mrb[0].mxu0 %v76_v21  ;;  %1300 = vmatprep.subr.bf16.mxu1 %v1405_v0 }
  0x23   :  { %308 = vmatprep.mubr.bf16.mxu0 %v79_v23  ;;  %v1407_v23 = vld [vmem:[%s1766_s4 + $0x8] sm:$0xff]  }
  0x25   :  { %1301 = vmatpush3.bf16.msra.mxu1 %v1405_v0 }
  0x26   :  { %1334 = vmatprep.subr.bf16.mxu1 %v1406_v10 }
  0x2a   :  { %309 = vmatmul.mubr.bf16.gmra.mrb[4].mxu0 %v78_v26 }
  0x2b   :  { %316 = vmatprep.mubr.bf16.mxu0 %v81_v27 }
  0x32   :  { %317 = vmatmul.mubr.bf16.gmra.mrb[8].mxu0 %v80_v29 }
  0x33   :  { %324 = vmatprep.mubr.bf16.mxu0 %v83_v30 }
  0x3a   :  { %325 = vmatmul.mubr.bf16.gmra.mrb[12].mxu0 %v82_v32  ;;  %v1409_v32 = vld [vmem:[%s1766_s4 + $0x18] sm:$0xff]  }
  0x3b   :  { %332 = vmatprep.mubr.bf16.mxu0 %v85_v33 }
  0x42   :  { %333 = vmatmul.mubr.bf16.gmra.mrb[16].mxu0 %v84_v35 }
  0x43   :  { %340 = vmatprep.mubr.bf16.mxu0 %v87_v36 }
  0x4a   :  { %341 = vmatmul.mubr.bf16.gmra.mrb[20].mxu0 %v86_v38 }
  0x4b   :  { %348 = vmatprep.mubr.bf16.mxu0 %v89_v39 }
  0x52   :  { %349 = vmatmul.mubr.bf16.gmra.mrb[24].mxu0 %v88_v41  ;;  %v1411_v41 = vld [vmem:[%s1766_s4 + $0x28] sm:$0xff]  }
  0x53   :  { %356 = vmatprep.mubr.bf16.mxu0 %v91_v42 }
  0x5a   :  { %357 = vmatmul.mubr.bf16.gmra.mrb[28].mxu0 %v90_v44 }
  0x5b   :  { %364 = vmatprep.mubr.bf16.mxu0 %v93_v45 }
  0x62   :  { %365 = vmatmul.mubr.bf16.gmra.mrb[32].mxu0 %v92_v47 }
  0x63   :  { %372 = vmatprep.mubr.bf16.mxu0 %v95_v48 }
  0x6a   :  { %373 = vmatmul.mubr.bf16.gmra.mrb[36].mxu0 %v94_v50 }
  0x6b   :  { %380 = vmatprep.mubr.bf16.mxu0 %v97_v51 }
  0x72   :  { %381 = vmatmul.mubr.bf16.gmra.mrb[40].mxu0 %v96_v53 }
  0x73   :  { %388 = vmatprep.mubr.bf16.mxu0 %v99_v54 }
  0x7a   :  { %389 = vmatmul.mubr.bf16.gmra.mrb[44].mxu0 %v98_v57 }
  0x7b   :  { %396 = vmatprep.mubr.bf16.mxu0 %v101_v58 }
  0x82   :  { %397 = vmatmul.mubr.bf16.gmra.mrb[48].mxu0 %v100_v62 }
  0x83   :  { %404 = vmatprep.mubr.bf16.mxu0 %v103_v63 }
  0x8a   :  { %405 = vmatmul.mubr.bf16.gmra.mrb[52].mxu0 %v102_v2 }
  0x8b   :  { %412 = vmatprep.mubr.bf16.mxu0 %v105_v3 }
  0x92   :  { %413 = vmatmul.mubr.bf16.gmra.mrb[56].mxu0 %v104_v5 }
  0x93   :  { %420 = vmatprep.mubr.bf16.mxu0 %v107_v6 }
  0x9a   :  { %421 = vmatmul.mubr.bf16.gmra.mrb[60].mxu0 %v106_v7 }
  0xf5   :  { %v1142_v8 = vpop.f32.mrb[0].mxu0 }
  0xf6   :  { %v1143_v9 = vpop.f32.mrb[1].mxu0 }
  0xf7   :  { %v1144_v11 = vadd.f32 %v1143_v9, %v1142_v8  ;;  %v1145_v12 = vpop.f32.mrb[2].mxu0 }
  0xf8   :  { %v1146_v13 = vpop.f32.mrb[3].mxu0 }
  0xf9   :  { %v1147_v14 = vadd.f32 %v1146_v13, %v1145_v12 }
  0xfb   :  { %v528_v15 = vpack.c.bf16 %v1147_v14, %v1144_v11 }
  0xfd   :  { %v1148_v16 = vpop.f32.mrb[4].mxu0  ;;  %1302 = vmatprep.mubr.bf16.mxu1 %v528_v15 }
  0xfe   :  { %v1149_v17 = vpop.f32.mrb[5].mxu0 }
  0xff   :  { %v1150_v18 = vadd.f32 %v1149_v17, %v1148_v16  ;;  %v1151_v19 = vpop.f32.mrb[6].mxu0 }
 0x100   :  { %v1152_v20 = vpop.f32.mrb[7].mxu0 }
 0x101   :  { %v1153_v21 = vadd.f32 %v1152_v20, %v1151_v19 }
 0x103   :  { %v529_v22 = vpack.c.bf16 %v1153_v21, %v1150_v18 }
 0x105   :  { %v1154_v24 = vpop.f32.mrb[8].mxu0  ;;  %1303 = vmatmul.mubr.bf16.vlgmr.msra.gmra.mrb[0].mxu1 %v529_v22 }
 0x106   :  { %v1155_v25 = vpop.f32.mrb[9].mxu0  ;;  %1335 = vmatpush3.bf16.msra.mxu1 %v1406_v10 }
 0x107   :  { %v1156_v26 = vadd.f32 %v1155_v25, %v1154_v24  ;;  %v1157_v27 = vpop.f32.mrb[10].mxu0  ;;  %1336 = vmatprep.subr.bf16.mxu1 %v1407_v23 }
 0x108   :  { %v1158_v29 = vpop.f32.mrb[11].mxu0 }
 0x109   :  { %v1159_v30 = vadd.f32 %v1158_v29, %v1157_v27 }
 0x10a   :  { %1337 = vmatpush3.bf16.msra.mxu1 %v1407_v23 }
 0x10b   :  { %v530_v31 = vpack.c.bf16 %v1159_v30, %v1156_v26  ;;  %1338 = vmatprep.subr.bf16.mxu1 %v1408_v28 }
 0x10d   :  { %v1160_v33 = vpop.f32.mrb[12].mxu0  ;;  %1306 = vmatprep.mubr.bf16.mxu1 %v530_v31 }
 0x10e   :  { %v1161_v34 = vpop.f32.mrb[13].mxu0  ;;  %1339 = vmatpush3.bf16.msra.mxu1 %v1408_v28 }
 0x10f   :  { %v1162_v35 = vadd.f32 %v1161_v34, %v1160_v33  ;;  %v1163_v36 = vpop.f32.mrb[14].mxu0  ;;  %1340 = vmatprep.subr.bf16.mxu1 %v1409_v32 }
 0x110   :  { %v1164_v38 = vpop.f32.mrb[15].mxu0 }
 0x111   :  { %v1165_v39 = vadd.f32 %v1164_v38, %v1163_v36 }
 0x112   :  { %1341 = vmatpush3.bf16.msra.mxu1 %v1409_v32 }
 0x113   :  { %v531_v40 = vpack.c.bf16 %v1165_v39, %v1162_v35  ;;  %1342 = vmatprep.subr.bf16.mxu1 %v1410_v37 }
 0x115   :  { %v1166_v42 = vpop.f32.mrb[16].mxu0  ;;  %1307 = vmatmul.mubr.bf16.gmra.mrb[4].mxu1 %v531_v40  ;;  %v1412_v40 = vld [vmem:[%s1766_s4 + $0x30] sm:$0xff]  }
 0x116   :  { %v1167_v43 = vpop.f32.mrb[17].mxu0  ;;  %1343 = vmatpush3.bf16.msra.mxu1 %v1410_v37 }
 0x117   :  { %v1168_v44 = vadd.f32 %v1167_v43, %v1166_v42  ;;  %v1169_v45 = vpop.f32.mrb[18].mxu0  ;;  %1344 = vmatprep.subr.bf16.mxu1 %v1411_v41  ;;  %v1413_v43 = vld [vmem:[%s1766_s4 + $0x38] sm:$0xff]  }
 0x118   :  { %v1170_v46 = vpop.f32.mrb[19].mxu0 }
 0x119   :  { %v1171_v47 = vadd.f32 %v1170_v46, %v1169_v45 }
 0x11a   :  { %1345 = vmatpush3.bf16.msra.mxu1 %v1411_v41 }
 0x11b   :  { %v532_v48 = vpack.c.bf16 %v1171_v47, %v1168_v44  ;;  %1346 = vmatprep.subr.bf16.mxu1 %v1412_v40 }
 0x11d   :  { %v1172_v49 = vpop.f32.mrb[20].mxu0  ;;  %1310 = vmatprep.mubr.bf16.mxu1 %v532_v48 }
 0x11e   :  { %v1173_v50 = vpop.f32.mrb[21].mxu0  ;;  %1347 = vmatpush3.bf16.msra.mxu1 %v1412_v40 }
 0x11f   :  { %v1174_v51 = vadd.f32 %v1173_v50, %v1172_v49  ;;  %v1175_v52 = vpop.f32.mrb[22].mxu0  ;;  %1348 = vmatprep.subr.bf16.mxu1 %v1413_v43 }
 0x120   :  { %v1176_v53 = vpop.f32.mrb[23].mxu0 }
 0x121   :  { %v1177_v54 = vadd.f32 %v1176_v53, %v1175_v52 }
 0x122   :  { %1349 = vmatpush3.bf16.msra.mxu1 %v1413_v43 }
 0x123   :  { %v533_v55 = vpack.c.bf16 %v1177_v54, %v1174_v51 }
 0x125   :  { %v1178_v56 = vpop.f32.mrb[24].mxu0  ;;  %1311 = vmatmul.mubr.bf16.gmra.mrb[8].mxu1 %v533_v55 }
 0x126   :  { %v1179_v57 = vpop.f32.mrb[25].mxu0 }
 0x127   :  { %v1180_v58 = vadd.f32 %v1179_v57, %v1178_v56  ;;  %v1181_v59 = vpop.f32.mrb[26].mxu0 }
 0x128   :  { %v1182_v60 = vpop.f32.mrb[27].mxu0 }
 0x129   :  { %v1183_v61 = vadd.f32 %v1182_v60, %v1181_v59 }
 0x12b   :  { %v534_v62 = vpack.c.bf16 %v1183_v61, %v1180_v58 }
 0x12d   :  { %v1184_v63 = vpop.f32.mrb[28].mxu0  ;;  %1314 = vmatprep.mubr.bf16.mxu1 %v534_v62 }
 0x12e   :  { %v1185_v0 = vpop.f32.mrb[29].mxu0 }
 0x12f   :  { %v1186_v1 = vadd.f32 %v1185_v0, %v1184_v63  ;;  %v1187_v2 = vpop.f32.mrb[30].mxu0  ;;  %v1596_v0 = vld [vmem:[%s1767_s3] ss:$0 sm:$0xff] }
 0x130   :  { %v1188_v3 = vpop.f32.mrb[31].mxu0 }
 0x131   :  { %v1189_v4 = vadd.f32 %v1188_v3, %v1187_v2 }
 0x133   :  { %v535_v5 = vpack.c.bf16 %v1189_v4, %v1186_v1 }
 0x135   :  { %v1190_v6 = vpop.f32.mrb[32].mxu0  ;;  %1315 = vmatmul.mubr.bf16.gmra.mrb[12].mxu1 %v535_v5 }
 0x136   :  { %v1191_v7 = vpop.f32.mrb[33].mxu0 }
 0x137   :  { %v1192_v8 = vadd.f32 %v1191_v7, %v1190_v6  ;;  %v1193_v9 = vpop.f32.mrb[34].mxu0 }
 0x138   :  { %v1194_v10 = vpop.f32.mrb[35].mxu0 }
 0x139   :  { %v1195_v11 = vadd.f32 %v1194_v10, %v1193_v9 }
 0x13b   :  { %v536_v12 = vpack.c.bf16 %v1195_v11, %v1192_v8 }
 0x13d   :  { %v1196_v13 = vpop.f32.mrb[36].mxu0  ;;  %1318 = vmatprep.mubr.bf16.mxu1 %v536_v12 }
 0x13e   :  { %v1197_v14 = vpop.f32.mrb[37].mxu0 }
 0x13f   :  { %v1198_v15 = vadd.f32 %v1197_v14, %v1196_v13  ;;  %v1199_v16 = vpop.f32.mrb[38].mxu0 }
 0x140   :  { %v1200_v17 = vpop.f32.mrb[39].mxu0 }
 0x141   :  { %v1201_v18 = vadd.f32 %v1200_v17, %v1199_v16 }
 0x143   :  { %v537_v19 = vpack.c.bf16 %v1201_v18, %v1198_v15 }
 0x145   :  { %v1202_v20 = vpop.f32.mrb[40].mxu0  ;;  %1319 = vmatmul.mubr.bf16.gmra.mrb[16].mxu1 %v537_v19 }
 0x146   :  { %v1203_v21 = vpop.f32.mrb[41].mxu0 }
 0x147   :  { %v1204_v22 = vadd.f32 %v1203_v21, %v1202_v20  ;;  %v1205_v23 = vpop.f32.mrb[42].mxu0 }
 0x148   :  { %v1206_v24 = vpop.f32.mrb[43].mxu0 }
 0x149   :  { %v1207_v25 = vadd.f32 %v1206_v24, %v1205_v23 }
 0x14b   :  { %v538_v26 = vpack.c.bf16 %v1207_v25, %v1204_v22 }
 0x14d   :  { %v1208_v27 = vpop.f32.mrb[44].mxu0  ;;  %1322 = vmatprep.mubr.bf16.mxu1 %v538_v26 }
 0x14e   :  { %v1209_v28 = vpop.f32.mrb[45].mxu0 }
 0x14f   :  { %v1210_v29 = vadd.f32 %v1209_v28, %v1208_v27  ;;  %v1211_v30 = vpop.f32.mrb[46].mxu0 }
 0x150   :  { %v1212_v31 = vpop.f32.mrb[47].mxu0 }
 0x151   :  { %v1213_v32 = vadd.f32 %v1212_v31, %v1211_v30 }
 0x153   :  { %v539_v33 = vpack.c.bf16 %v1213_v32, %v1210_v29 }
 0x155   :  { %v1214_v34 = vpop.f32.mrb[48].mxu0  ;;  %1323 = vmatmul.mubr.bf16.gmra.mrb[20].mxu1 %v539_v33 }
 0x156   :  { %v1215_v35 = vpop.f32.mrb[49].mxu0 }
 0x157   :  { %v1216_v36 = vadd.f32 %v1215_v35, %v1214_v34  ;;  %v1217_v37 = vpop.f32.mrb[50].mxu0 }
 0x158   :  { %v1218_v38 = vpop.f32.mrb[51].mxu0 }
 0x159   :  { %v1219_v39 = vadd.f32 %v1218_v38, %v1217_v37 }
 0x15b   :  { %v540_v41 = vpack.c.bf16 %v1219_v39, %v1216_v36 }
 0x15d   :  { %v1220_v42 = vpop.f32.mrb[52].mxu0  ;;  %1326 = vmatprep.mubr.bf16.mxu1 %v540_v41 }
 0x15e   :  { %v1221_v44 = vpop.f32.mrb[53].mxu0 }
 0x15f   :  { %v1222_v45 = vadd.f32 %v1221_v44, %v1220_v42  ;;  %v1223_v46 = vpop.f32.mrb[54].mxu0 }
 0x160   :  { %v1224_v47 = vpop.f32.mrb[55].mxu0 }
 0x161   :  { %v1225_v48 = vadd.f32 %v1224_v47, %v1223_v46 }
 0x163   :  { %v541_v49 = vpack.c.bf16 %v1225_v48, %v1222_v45 }
 0x165   :  { %v1226_v50 = vpop.f32.mrb[56].mxu0  ;;  %1327 = vmatmul.mubr.bf16.gmra.mrb[24].mxu1 %v541_v49 }
 0x166   :  { %v1227_v51 = vpop.f32.mrb[57].mxu0 }
 0x167   :  { %v1228_v52 = vadd.f32 %v1227_v51, %v1226_v50  ;;  %v1229_v53 = vpop.f32.mrb[58].mxu0 }
 0x168   :  { %v1230_v54 = vpop.f32.mrb[59].mxu0 }
 0x169   :  { %v1231_v55 = vadd.f32 %v1230_v54, %v1229_v53 }
 0x16b   :  { %v542_v56 = vpack.c.bf16 %v1231_v55, %v1228_v52 }
 0x16d   :  { %v1232_v57 = vpop.f32.mrb[60].mxu0  ;;  %1330 = vmatprep.mubr.bf16.mxu1 %v542_v56 }
 0x16e   :  { %v1233_v58 = vpop.f32.mrb[61].mxu0 }
 0x16f   :  { %v1234_v59 = vadd.f32 %v1233_v58, %v1232_v57  ;;  %v1235_v60 = vpop.f32.mrb[62].mxu0 }
 0x170   :  { %v1236_v61 = vpop.f32.mrb[63].mxu0 }
 0x171   :  { %v1237_v62 = vadd.f32 %v1236_v61, %v1235_v60 }
 0x173   :  { %v543_v63 = vpack.c.bf16 %v1237_v62, %v1234_v59 }
 0x175   :  { %1331 = vmatmul.mubr.bf16.gmra.mrb[28].mxu1 %v543_v63 }
 0x1d8   :  { %v1304_v1 = vpop.f32.mrb[0].mxu1 }
 0x1d9   :  { %v658_v2 = vadd.f32 %v1304_v1, %v1596_v0  ;;  %v649_v3 = vpop.f32.mrb[1].mxu1 }
 0x1da   :  { %v650_v4 = vadd.f32 %v1596_v0, %v649_v3  ;;  %v1305_v5 = vpop.f32.mrb[2].mxu1 }
 0x1db   :  { %v661_v6 = vadd.f32 %v1305_v5, %v1596_v0  ;;  %v652_v7 = vpop.f32.mrb[3].mxu1  ;;  %v778_v9 = vmax.f32 %v658_v2, 0.0 }
 0x1dc   :  { %v653_v8 = vadd.f32 %v1596_v0, %v652_v7  ;;  %v776_v11 = vmax.f32 %v650_v4, 0.0 }
 0x1dd   :  { %v779_v10 = vmax.f32 %v661_v6, 0.0 }
 0x1de   :  { %v777_v12 = vmax.f32 %v653_v8, 0.0 }
 0x1df   :  { %v809_v13 = vpack.c.bf16 %v779_v10, %v778_v9 }
 0x1e0   :  { %v808_v14 = vpack.c.bf16 %v777_v12, %v776_v11 }
 0x1e2   :  { %1350 = vmatprep.mubr.bf16.mxu1 %v808_v14 }
 0x1e3   :  { %1351 = vmatmul.mubr.bf16.vlgmr.msra.gmra.mrb[32].mxu1 %v809_v13 }
 0x1e8   :  { %v1308_v15 = vpop.f32.mrb[4].mxu1 }
 0x1e9   :  { %v674_v16 = vadd.f32 %v1308_v15, %v1596_v0  ;;  %v665_v17 = vpop.f32.mrb[5].mxu1 }
 0x1ea   :  { %v666_v18 = vadd.f32 %v1596_v0, %v665_v17  ;;  %v1309_v19 = vpop.f32.mrb[6].mxu1 }
 0x1eb   :  { %v677_v20 = vadd.f32 %v1309_v19, %v1596_v0  ;;  %v668_v21 = vpop.f32.mrb[7].mxu1  ;;  %v782_v23 = vmax.f32 %v674_v16, 0.0 }
 0x1ec   :  { %v669_v22 = vadd.f32 %v1596_v0, %v668_v21  ;;  %v780_v25 = vmax.f32 %v666_v18, 0.0 }
 0x1ed   :  { %v783_v24 = vmax.f32 %v677_v20, 0.0 }
 0x1ee   :  { %v781_v26 = vmax.f32 %v669_v22, 0.0 }
 0x1ef   :  { %v811_v27 = vpack.c.bf16 %v783_v24, %v782_v23 }
 0x1f0   :  { %v810_v28 = vpack.c.bf16 %v781_v26, %v780_v25 }
 0x1f2   :  { %1354 = vmatprep.mubr.bf16.mxu1 %v810_v28 }
 0x1f3   :  { %1355 = vmatmul.mubr.bf16.gmra.mrb[36].mxu1 %v811_v27 }
 0x1f8   :  { %v1312_v29 = vpop.f32.mrb[8].mxu1 }
 0x1f9   :  { %v690_v30 = vadd.f32 %v1312_v29, %v1596_v0  ;;  %v681_v31 = vpop.f32.mrb[9].mxu1 }
 0x1fa   :  { %v682_v32 = vadd.f32 %v1596_v0, %v681_v31  ;;  %v1313_v33 = vpop.f32.mrb[10].mxu1 }
 0x1fb   :  { %v693_v34 = vadd.f32 %v1313_v33, %v1596_v0  ;;  %v684_v35 = vpop.f32.mrb[11].mxu1  ;;  %v786_v37 = vmax.f32 %v690_v30, 0.0 }
 0x1fc   :  { %v685_v36 = vadd.f32 %v1596_v0, %v684_v35  ;;  %v784_v39 = vmax.f32 %v682_v32, 0.0 }
 0x1fd   :  { %v787_v38 = vmax.f32 %v693_v34, 0.0 }
 0x1fe   :  { %v785_v40 = vmax.f32 %v685_v36, 0.0 }
 0x1ff   :  { %v813_v41 = vpack.c.bf16 %v787_v38, %v786_v37 }
 0x200   :  { %v812_v42 = vpack.c.bf16 %v785_v40, %v784_v39 }
 0x202   :  { %1358 = vmatprep.mubr.bf16.mxu1 %v812_v42 }
 0x203   :  { %1359 = vmatmul.mubr.bf16.gmra.mrb[40].mxu1 %v813_v41 }
 0x208   :  { %v1316_v43 = vpop.f32.mrb[12].mxu1 }
 0x209   :  { %v706_v44 = vadd.f32 %v1316_v43, %v1596_v0  ;;  %v697_v45 = vpop.f32.mrb[13].mxu1 }
 0x20a   :  { %v698_v46 = vadd.f32 %v1596_v0, %v697_v45  ;;  %v1317_v47 = vpop.f32.mrb[14].mxu1 }
 0x20b   :  { %v709_v48 = vadd.f32 %v1317_v47, %v1596_v0  ;;  %v700_v49 = vpop.f32.mrb[15].mxu1  ;;  %v790_v51 = vmax.f32 %v706_v44, 0.0 }
 0x20c   :  { %v701_v50 = vadd.f32 %v1596_v0, %v700_v49  ;;  %v788_v53 = vmax.f32 %v698_v46, 0.0 }
 0x20d   :  { %v791_v52 = vmax.f32 %v709_v48, 0.0 }
 0x20e   :  { %v789_v54 = vmax.f32 %v701_v50, 0.0  ;;  %v1633_v50 = vld [vmem:[%s1768_s5] ss:$0 sm:$0xff] }
 0x20f   :  { %v815_v55 = vpack.c.bf16 %v791_v52, %v790_v51 }
 0x210   :  { %v814_v56 = vpack.c.bf16 %v789_v54, %v788_v53 }
 0x212   :  { %1362 = vmatprep.mubr.bf16.mxu1 %v814_v56 }
 0x213   :  { %1363 = vmatmul.mubr.bf16.gmra.mrb[44].mxu1 %v815_v55 }
 0x218   :  { %v1320_v57 = vpop.f32.mrb[16].mxu1 }
 0x219   :  { %v722_v58 = vadd.f32 %v1320_v57, %v1596_v0  ;;  %v713_v59 = vpop.f32.mrb[17].mxu1 }
 0x21a   :  { %v714_v60 = vadd.f32 %v1596_v0, %v713_v59  ;;  %v1321_v61 = vpop.f32.mrb[18].mxu1 }
 0x21b   :  { %v725_v62 = vadd.f32 %v1321_v61, %v1596_v0  ;;  %v716_v63 = vpop.f32.mrb[19].mxu1  ;;  %v794_v2 = vmax.f32 %v722_v58, 0.0 }
 0x21c   :  { %v717_v1 = vadd.f32 %v1596_v0, %v716_v63  ;;  %v792_v4 = vmax.f32 %v714_v60, 0.0 }
 0x21d   :  { %v795_v3 = vmax.f32 %v725_v62, 0.0 }
 0x21e   :  { %v793_v5 = vmax.f32 %v717_v1, 0.0 }
 0x21f   :  { %v817_v6 = vpack.c.bf16 %v795_v3, %v794_v2 }
 0x220   :  { %v816_v7 = vpack.c.bf16 %v793_v5, %v792_v4 }
 0x222   :  { %1366 = vmatprep.mubr.bf16.mxu1 %v816_v7 }
 0x223   :  { %1367 = vmatmul.mubr.bf16.gmra.mrb[48].mxu1 %v817_v6 }
 0x228   :  { %v1324_v8 = vpop.f32.mrb[20].mxu1 }
 0x229   :  { %v738_v9 = vadd.f32 %v1324_v8, %v1596_v0  ;;  %v729_v10 = vpop.f32.mrb[21].mxu1 }
 0x22a   :  { %v730_v11 = vadd.f32 %v1596_v0, %v729_v10  ;;  %v1325_v12 = vpop.f32.mrb[22].mxu1 }
 0x22b   :  { %v741_v13 = vadd.f32 %v1325_v12, %v1596_v0  ;;  %v732_v14 = vpop.f32.mrb[23].mxu1  ;;  %v798_v16 = vmax.f32 %v738_v9, 0.0 }
 0x22c   :  { %v733_v15 = vadd.f32 %v1596_v0, %v732_v14  ;;  %v796_v18 = vmax.f32 %v730_v11, 0.0 }
 0x22d   :  { %v799_v17 = vmax.f32 %v741_v13, 0.0 }
 0x22e   :  { %v797_v19 = vmax.f32 %v733_v15, 0.0 }
 0x22f   :  { %v819_v20 = vpack.c.bf16 %v799_v17, %v798_v16 }
 0x230   :  { %v818_v21 = vpack.c.bf16 %v797_v19, %v796_v18 }
 0x232   :  { %1370 = vmatprep.mubr.bf16.mxu1 %v818_v21 }
 0x233   :  { %1371 = vmatmul.mubr.bf16.gmra.mrb[52].mxu1 %v819_v20 }
 0x238   :  { %v1328_v22 = vpop.f32.mrb[24].mxu1 }
 0x239   :  { %v754_v23 = vadd.f32 %v1328_v22, %v1596_v0  ;;  %v745_v24 = vpop.f32.mrb[25].mxu1 }
 0x23a   :  { %v746_v25 = vadd.f32 %v1596_v0, %v745_v24  ;;  %v1329_v26 = vpop.f32.mrb[26].mxu1 }
 0x23b   :  { %v757_v27 = vadd.f32 %v1329_v26, %v1596_v0  ;;  %v748_v28 = vpop.f32.mrb[27].mxu1  ;;  %v802_v30 = vmax.f32 %v754_v23, 0.0 }
 0x23c   :  { %v749_v29 = vadd.f32 %v1596_v0, %v748_v28  ;;  %v800_v32 = vmax.f32 %v746_v25, 0.0 }
 0x23d   :  { %v803_v31 = vmax.f32 %v757_v27, 0.0 }
 0x23e   :  { %v801_v33 = vmax.f32 %v749_v29, 0.0 }
 0x23f   :  { %v821_v34 = vpack.c.bf16 %v803_v31, %v802_v30 }
 0x240   :  { %v820_v35 = vpack.c.bf16 %v801_v33, %v800_v32 }
 0x242   :  { %1374 = vmatprep.mubr.bf16.mxu1 %v820_v35 }
 0x243   :  { %1375 = vmatmul.mubr.bf16.gmra.mrb[56].mxu1 %v821_v34 }
 0x248   :  { %v1332_v36 = vpop.f32.mrb[28].mxu1 }
 0x249   :  { %v770_v37 = vadd.f32 %v1332_v36, %v1596_v0  ;;  %v761_v38 = vpop.f32.mrb[29].mxu1 }
 0x24a   :  { %v762_v39 = vadd.f32 %v1596_v0, %v761_v38  ;;  %v1333_v40 = vpop.f32.mrb[30].mxu1 }
 0x24b   :  { %v773_v41 = vadd.f32 %v1333_v40, %v1596_v0  ;;  %v764_v42 = vpop.f32.mrb[31].mxu1  ;;  %v806_v44 = vmax.f32 %v770_v37, 0.0 }
 0x24c   :  { %v765_v43 = vadd.f32 %v1596_v0, %v764_v42  ;;  %v804_v46 = vmax.f32 %v762_v39, 0.0 }
 0x24d   :  { %v807_v45 = vmax.f32 %v773_v41, 0.0 }
 0x24e   :  { %v805_v47 = vmax.f32 %v765_v43, 0.0 }
 0x24f   :  { %v823_v48 = vpack.c.bf16 %v807_v45, %v806_v44 }
 0x250   :  { %v822_v49 = vpack.c.bf16 %v805_v47, %v804_v46 }
 0x252   :  { %1378 = vmatprep.mubr.bf16.mxu1 %v822_v49 }
 0x253   :  { %1379 = vmatmul.mubr.bf16.gmra.mrb[60].mxu1 %v823_v48 }
 0x2b6   :  { %v1352_v51 = vpop.f32.mrb[32].mxu1 }
 0x2b7   :  { %v938_v52 = vadd.f32 %v1352_v51, %v1633_v50  ;;  %v929_v53 = vpop.f32.mrb[33].mxu1 }
 0x2b8   :  { %v930_v54 = vadd.f32 %v1633_v50, %v929_v53  ;;  %v1353_v0 = vpop.f32.mrb[34].mxu1 }
 0x2b9   :  { %1058 = vst [vmem:[%s1769_s6 + $0x10] sm:$0xff] %v938_v52  ;;  %v941_v55 = vadd.f32 %v1353_v0, %v1633_v50  ;;  %v932_v56 = vpop.f32.mrb[35].mxu1 }
 0x2ba   :  { %1056 = vst [vmem:[%s1769_s6] sm:$0xff] %v930_v54  ;;  %v933_v57 = vadd.f32 %v1633_v50, %v932_v56 }
 0x2bb   :  { %1059 = vst [vmem:[%s1769_s6 + $0x18] sm:$0xff] %v941_v55 }
 0x2bc   :  { %1057 = vst [vmem:[%s1769_s6 + $0x8] sm:$0xff] %v933_v57 }
 0x2c6   :  { %v1356_v58 = vpop.f32.mrb[36].mxu1 }
 0x2c7   :  { %v954_v59 = vadd.f32 %v1356_v58, %v1633_v50  ;;  %v945_v60 = vpop.f32.mrb[37].mxu1 }
 0x2c8   :  { %v946_v61 = vadd.f32 %v1633_v50, %v945_v60  ;;  %v1357_v62 = vpop.f32.mrb[38].mxu1 }
 0x2c9   :  { %1062 = vst [vmem:[%s1769_s6 + $0x30] sm:$0xff] %v954_v59  ;;  %v957_v63 = vadd.f32 %v1357_v62, %v1633_v50  ;;  %v948_v1 = vpop.f32.mrb[39].mxu1 }
 0x2ca   :  { %1060 = vst [vmem:[%s1769_s6 + $0x20] sm:$0xff] %v946_v61  ;;  %v949_v2 = vadd.f32 %v1633_v50, %v948_v1 }
 0x2cb   :  { %1063 = vst [vmem:[%s1769_s6 + $0x38] sm:$0xff] %v957_v63 }
 0x2cc   :  { %1061 = vst [vmem:[%s1769_s6 + $0x28] sm:$0xff] %v949_v2 }
 0x2d6   :  { %v1360_v3 = vpop.f32.mrb[40].mxu1 }
 0x2d7   :  { %v970_v4 = vadd.f32 %v1360_v3, %v1633_v50  ;;  %v961_v5 = vpop.f32.mrb[41].mxu1 }
 0x2d8   :  { %v962_v6 = vadd.f32 %v1633_v50, %v961_v5  ;;  %v1361_v7 = vpop.f32.mrb[42].mxu1 }
 0x2d9   :  { %1066 = vst [vmem:[%s1769_s6 + $0x50] sm:$0xff] %v970_v4  ;;  %v973_v8 = vadd.f32 %v1361_v7, %v1633_v50  ;;  %v964_v9 = vpop.f32.mrb[43].mxu1 }
 0x2da   :  { %1064 = vst [vmem:[%s1769_s6 + $0x40] sm:$0xff] %v962_v6  ;;  %v965_v10 = vadd.f32 %v1633_v50, %v964_v9 }
 0x2db   :  { %1067 = vst [vmem:[%s1769_s6 + $0x58] sm:$0xff] %v973_v8 }
 0x2dc   :  { %1065 = vst [vmem:[%s1769_s6 + $0x48] sm:$0xff] %v965_v10 }
 0x2e6   :  { %v1364_v11 = vpop.f32.mrb[44].mxu1 }
 0x2e7   :  { %v986_v12 = vadd.f32 %v1364_v11, %v1633_v50  ;;  %v977_v13 = vpop.f32.mrb[45].mxu1 }
 0x2e8   :  { %v978_v14 = vadd.f32 %v1633_v50, %v977_v13  ;;  %v1365_v15 = vpop.f32.mrb[46].mxu1 }
 0x2e9   :  { %1070 = vst [vmem:[%s1769_s6 + $0x70] sm:$0xff] %v986_v12  ;;  %v989_v16 = vadd.f32 %v1365_v15, %v1633_v50  ;;  %v980_v17 = vpop.f32.mrb[47].mxu1 }
 0x2ea   :  { %1068 = vst [vmem:[%s1769_s6 + $0x60] sm:$0xff] %v978_v14  ;;  %v981_v18 = vadd.f32 %v1633_v50, %v980_v17 }
 0x2eb   :  { %1071 = vst [vmem:[%s1769_s6 + $0x78] sm:$0xff] %v989_v16 }
 0x2ec   :  { %1069 = vst [vmem:[%s1769_s6 + $0x68] sm:$0xff] %v981_v18 }
 0x2f6   :  { %v1368_v19 = vpop.f32.mrb[48].mxu1 }
 0x2f7   :  { %v1002_v20 = vadd.f32 %v1368_v19, %v1633_v50  ;;  %v993_v21 = vpop.f32.mrb[49].mxu1 }
 0x2f8   :  { %v994_v22 = vadd.f32 %v1633_v50, %v993_v21  ;;  %v1369_v23 = vpop.f32.mrb[50].mxu1 }
 0x2f9   :  { %1074 = vst [vmem:[%s1769_s6 + $0x90] sm:$0xff] %v1002_v20  ;;  %v1005_v24 = vadd.f32 %v1369_v23, %v1633_v50  ;;  %v996_v25 = vpop.f32.mrb[51].mxu1 }
 0x2fa   :  { %1072 = vst [vmem:[%s1769_s6 + $0x80] sm:$0xff] %v994_v22  ;;  %v997_v26 = vadd.f32 %v1633_v50, %v996_v25 }
 0x2fb   :  { %1075 = vst [vmem:[%s1769_s6 + $0x98] sm:$0xff] %v1005_v24 }
 0x2fc   :  { %1073 = vst [vmem:[%s1769_s6 + $0x88] sm:$0xff] %v997_v26 }
 0x306   :  { %v1372_v27 = vpop.f32.mrb[52].mxu1 }
 0x307   :  { %v1018_v28 = vadd.f32 %v1372_v27, %v1633_v50  ;;  %v1009_v29 = vpop.f32.mrb[53].mxu1 }
 0x308   :  { %v1010_v30 = vadd.f32 %v1633_v50, %v1009_v29  ;;  %v1373_v31 = vpop.f32.mrb[54].mxu1 }
 0x309   :  { %1078 = vst [vmem:[%s1769_s6 + $0xb0] sm:$0xff] %v1018_v28  ;;  %v1021_v32 = vadd.f32 %v1373_v31, %v1633_v50  ;;  %v1012_v33 = vpop.f32.mrb[55].mxu1 }
 0x30a   :  { %1076 = vst [vmem:[%s1769_s6 + $0xa0] sm:$0xff] %v1010_v30  ;;  %v1013_v34 = vadd.f32 %v1633_v50, %v1012_v33 }
 0x30b   :  { %1079 = vst [vmem:[%s1769_s6 + $0xb8] sm:$0xff] %v1021_v32 }
 0x30c   :  { %1077 = vst [vmem:[%s1769_s6 + $0xa8] sm:$0xff] %v1013_v34 }
 0x316   :  { %v1376_v35 = vpop.f32.mrb[56].mxu1 }
 0x317   :  { %v1034_v36 = vadd.f32 %v1376_v35, %v1633_v50  ;;  %v1025_v37 = vpop.f32.mrb[57].mxu1 }
 0x318   :  { %v1026_v38 = vadd.f32 %v1633_v50, %v1025_v37  ;;  %v1377_v39 = vpop.f32.mrb[58].mxu1 }
 0x319   :  { %1082 = vst [vmem:[%s1769_s6 + $0xd0] sm:$0xff] %v1034_v36  ;;  %v1037_v40 = vadd.f32 %v1377_v39, %v1633_v50  ;;  %v1028_v41 = vpop.f32.mrb[59].mxu1 }
 0x31a   :  { %1080 = vst [vmem:[%s1769_s6 + $0xc0] sm:$0xff] %v1026_v38  ;;  %v1029_v42 = vadd.f32 %v1633_v50, %v1028_v41 }
 0x31b   :  { %1083 = vst [vmem:[%s1769_s6 + $0xd8] sm:$0xff] %v1037_v40 }
 0x31c   :  { %1081 = vst [vmem:[%s1769_s6 + $0xc8] sm:$0xff] %v1029_v42 }
 0x326   :  { %v1380_v43 = vpop.f32.mrb[60].mxu1 }
 0x327   :  { %v1050_v44 = vadd.f32 %v1380_v43, %v1633_v50  ;;  %v1041_v45 = vpop.f32.mrb[61].mxu1 }
 0x328   :  { %v1042_v46 = vadd.f32 %v1633_v50, %v1041_v45  ;;  %v1381_v47 = vpop.f32.mrb[62].mxu1 }
 0x329   :  { %1086 = vst [vmem:[%s1769_s6 + $0xf0] sm:$0xff] %v1050_v44  ;;  %v1053_v48 = vadd.f32 %v1381_v47, %v1633_v50  ;;  %v1044_v49 = vpop.f32.mrb[63].mxu1 }
 0x32a   :  { %1084 = vst [vmem:[%s1769_s6 + $0xe0] sm:$0xff] %v1042_v46  ;;  %v1045_v51 = vadd.f32 %v1633_v50, %v1044_v49 }
 0x32b   :  { %1087 = vst [vmem:[%s1769_s6 + $0xf8] sm:$0xff] %v1053_v48 }
 0x32c   :  { %1085 = vst [vmem:[%s1769_s6 + $0xe8] sm:$0xff] %v1045_v51 }

</bundles_post_ra>
